<compile_context>
chip_gen: v7x
topology: tpu7x:2x2x1
jax: 0.10.0
libtpu: 0.0.40
codegen_flags: <defaults>
</compile_context>

<pallas_src>
import functools

import jax
import jax.numpy as jnp
from jax.experimental import pallas as pl
from jax.experimental.pallas import tpu as pltpu


def _round_up(x, m):
    return ((x + m - 1) // m) * m


# ----------------------------------------------------------------------------
# Fused multi-step / multi-layer LSTM kernel (PyTorch gate order i, f, g, o)
# ----------------------------------------------------------------------------
def _stack_lstm_kernel(h0c0_ref, x_ref, w_ref, b_ref, out_ref,
                       state_ref, xh_ref, *, num_layers, hidden_pad, x_pad):
    """One grid step = one timestep through all layers.

    h0c0_ref : (1, S)             initial state slab (S = 2*L*H_pad)
    x_ref    : (1, 1, X_pad)      this step's padded input row
    w_ref    : (L, X_pad+H_pad, 4*H_pad)   pre-transposed [W_ih^T ; W_hh^T]
    b_ref    : (L, 1, 4*H_pad)    b_ih + b_hh per layer
    out_ref  : (1, 1, S)          this step's state slab [h_0|c_0|h_1|c_1|...]
    state_ref: (1, S)  VMEM scratch, persists across grid steps
    xh_ref   : (1, X_pad+H_pad) VMEM scratch holding [x | h]
    """
    Hp, Xp = hidden_pad, x_pad
    t = pl.program_id(0)

    @pl.when(t == 0)
    def _():
        state_ref[...] = h0c0_ref[...]

    # Step input into the x slot of the persistent [x | h] row (no concat).
    xh_ref[:, 0:Xp] = x_ref[0]

    for layer in range(num_layers):                  # static unroll (small L)
        off = layer * 2 * Hp
        h_prev = state_ref[:, off:off + Hp]          # (1, Hp)
        c_prev = state_ref[:, off + Hp:off + 2 * Hp] # (1, Hp)

        xh_ref[:, Xp:Xp + Hp] = h_prev

        w = w_ref[layer]                             # (Xp+Hp, 4*Hp)
        gates = jnp.dot(xh_ref[...].astype(w.dtype), w,
                        preferred_element_type=jnp.float32) + b_ref[layer]

        # Lane-aligned gate slices (Hp is a multiple of 128) -> unmasked.
        i_g = jax.nn.sigmoid(gates[:, 0 * Hp:1 * Hp])
        f_g = jax.nn.sigmoid(gates[:, 1 * Hp:2 * Hp])
        g_g = jnp.tanh(gates[:, 2 * Hp:3 * Hp])
        o_g = jax.nn.sigmoid(gates[:, 3 * Hp:4 * Hp])

        c_new = f_g * c_prev + i_g * g_g
        h_new = o_g * jnp.tanh(c_new)

        state_ref[:, off:off + Hp] = h_new
        state_ref[:, off + Hp:off + 2 * Hp] = c_new

        if layer + 1 < num_layers:
            # Next layer's input: lanes >= hidden hit zero weight rows.
            xh_ref[:, 0:Hp] = h_new

    # One unmasked lane-dense store of the whole per-step state slab.
    out_ref[...] = state_ref[...].reshape(1, 1, -1)


@jax.jit
def _stack_lstm_run(x_slab, state0, w_all, b_all):
    """Run T pushes in ONE pallas_call.

    x_slab: (T, 1, X_pad)   state0: (1, S)
    w_all : (L, X_pad+H_pad, 4*H_pad)   b_all: (L, 1, 4*H_pad)
    returns (T, 1, S) state slabs (one per push).
    """
    T = x_slab.shape[0]
    L, PH, G4 = w_all.shape
    Hp = G4 // 4
    Xp = PH - Hp
    S = 2 * L * Hp

    kernel = functools.partial(
        _stack_lstm_kernel, num_layers=L, hidden_pad=Hp, x_pad=Xp)

    grid_spec = pltpu.PrefetchScalarGridSpec(
        num_scalar_prefetch=0,
        grid=(T,),
        in_specs=[
            pl.BlockSpec((1, S), lambda t: (0, 0)),            # h0c0 (resident)
            pl.BlockSpec((1, 1, Xp), lambda t: (t, 0, 0)),     # x rows streamed
            pl.BlockSpec((L, PH, G4), lambda t: (0, 0, 0)),    # weights resident
            pl.BlockSpec((L, 1, G4), lambda t: (0, 0, 0)),     # bias resident
        ],
        out_specs=pl.BlockSpec((1, 1, S), lambda t: (t, 0, 0)),
        scratch_shapes=[pltpu.VMEM((1, S), jnp.float32),       # persistent h/c
                        pltpu.VMEM((1, PH), jnp.float32)],     # [x | h] row
    )

    w_bytes = w_all.size * w_all.dtype.itemsize
    b_bytes = b_all.size * b_all.dtype.itemsize
    vmem_need = (w_bytes + b_bytes
                 + 2 * S * 4                       # h0c0 block (double-buffered)
                 + 2 * (Xp * 4 + S * 4)            # streamed x / out blocks
                 + (S + PH) * 4)                   # scratch
    vmem_limit = min(int(vmem_need * 2) + (4 << 20), 64 << 20)

    cost = pl.CostEstimate(
        flops=2 * T * L * PH * G4,
        transcendentals=5 * T * L * Hp,
        bytes_accessed=w_bytes + b_bytes + (T * Xp + (T + 1) * S) * 4)

    return pl.pallas_call(
        kernel,
        out_shape=jax.ShapeDtypeStruct((T, 1, S), jnp.float32),
        grid_spec=grid_spec,
        compiler_params=pltpu.CompilerParams(
            dimension_semantics=("arbitrary",),
            vmem_limit_bytes=vmem_limit),
        cost_estimate=cost,
    )(state0, x_slab, w_all, b_all)


# ----------------------------------------------------------------------------
# Deterministic parameter init (mirrors reset_parameters: orthogonal weights,
# zero biases, zero h0/c0)
# ----------------------------------------------------------------------------
def _orthogonal(key, shape):
    rows, cols = shape
    a = jax.random.normal(key, (max(rows, cols), min(rows, cols)), jnp.float32)
    q, r = jnp.linalg.qr(a)
    d = jnp.diagonal(r)
    q = q * jnp.where(d >= 0.0, 1.0, -1.0)           # sign fix (guard sign(0))
    if rows < cols:
        q = q.T
    return q[:rows, :cols]


class EmptyStackError(Exception):
    def __init__(self):
        super().__init__('stack is already empty')


class StackLSTM:
    """JAX/Pallas port of rnng StackLSTM (forward semantics, eval mode)."""
    BATCH_SIZE = 1
    SEQ_LEN = 1

    def __init__(self, input_size, hidden_size, num_layers=1, dropout=0.0,
                 seed=0, param_dtype=jnp.float32):
        if input_size <= 0:
            raise ValueError(f'nonpositive input size: {input_size}')
        if hidden_size <= 0:
            raise ValueError(f'nonpositive hidden size: {hidden_size}')
        if num_layers <= 0:
            raise ValueError(f'nonpositive number of layers: {num_layers}')
        if dropout < 0.0 or dropout >= 1.0:
            raise ValueError(f'invalid dropout rate: {dropout}')
        self.input_size = input_size
        self.hidden_size = hidden_size
        self.num_layers = num_layers
        self.dropout = dropout

        H = hidden_size
        Hp = _round_up(H, 128)                        # lane-aligned hidden
        Xp = _round_up(max(input_size, Hp), 128)      # lane-aligned x slot
        self._hid_pad = Hp
        self._x_pad = Xp
        self._slab_width = 2 * num_layers * Hp        # S

        key = jax.random.PRNGKey(seed)
        w_layers, b_layers = [], []
        for layer in range(num_layers):
            in_dim = input_size if layer == 0 else hidden_size
            key, k1, k2 = jax.random.split(key, 3)
            w_ih = _orthogonal(k1, (4 * H, in_dim))   # like PyTorch weight_ih_l{k}
            w_hh = _orthogonal(k2, (4 * H, H))        # like PyTorch weight_hh_l{k}
            # Pre-transpose + pre-concat into (Xp+Hp, 4*Hp), gate blocks
            # lane-padded to Hp; padded rows/cols are zero.
            w_cat = jnp.zeros((Xp + Hp, 4 * Hp), jnp.float32)
            for g in range(4):
                w_cat = w_cat.at[:in_dim, g * Hp:g * Hp + H].set(
                    w_ih[g * H:(g + 1) * H, :].T)
                w_cat = w_cat.at[Xp:Xp + H, g * Hp:g * Hp + H].set(
                    w_hh[g * H:(g + 1) * H, :].T)
            w_layers.append(w_cat)
            b_layers.append(jnp.zeros((1, 4 * Hp), jnp.float32))  # b_ih + b_hh

        self.w_all = jnp.stack(w_layers).astype(param_dtype)   # (L, Xp+Hp, 4Hp)
        self.b_all = jnp.stack(b_layers)                        # (L, 1, 4Hp)

        # Parity with the PyTorch module (zero-initialized h0/c0 params).
        self.h0 = jnp.zeros((num_layers, self.BATCH_SIZE, H), jnp.float32)
        self.c0 = jnp.zeros((num_layers, self.BATCH_SIZE, H), jnp.float32)

        self._state0_slab = jnp.zeros((1, self._slab_width), jnp.float32)
        self._states_hist = [self._state0_slab]      # lane-dense slabs
        self._outputs_hist = []                       # (1, 1, H) top-layer h

    # -- state slab <-> PyTorch-shaped (h, c) ---------------------------------
    def _split_state(self, slab):
        L, H, Hp = self.num_layers, self.hidden_size, self._hid_pad
        s = slab.reshape(L, 2, Hp)
        h = s[:, 0, :H].reshape(L, self.BATCH_SIZE, H)
        c = s[:, 1, :H].reshape(L, self.BATCH_SIZE, H)
        return h, c

    # -- fused multi-push path -------------------------------------------------
    def push_many(self, inputs):
        """Push T inputs (T, input_size) with ONE fused pallas_call."""
        inputs = jnp.asarray(inputs, jnp.float32)
        if inputs.ndim == 1:
            inputs = inputs[None, :]
        if inputs.ndim != 2 or inputs.shape[1] != self.input_size:
            raise ValueError(
                f'expected inputs of shape (T, {self.input_size}), '
                f'got {tuple(inputs.shape)}')
        T = inputs.shape[0]

        x_slab = jnp.zeros((T, 1, self._x_pad), jnp.float32)
        x_slab = x_slab.at[:, 0, :self.input_size].set(inputs)

        out = _stack_lstm_run(x_slab, self._states_hist[-1],
                              self.w_all, self.b_all)          # (T, 1, S)

        Hp = self._hid_pad
        top_off = (self.num_layers - 1) * 2 * Hp
        for t in range(T):
            slab = out[t]                                       # (1, S)
            self._states_hist.append(slab)
            self._outputs_hist.append(
                slab[:, top_off:top_off + self.hidden_size]
                .reshape(self.SEQ_LEN, self.BATCH_SIZE, self.hidden_size))
        return self._split_state(self._states_hist[-1])

    # -- PyTorch-compatible single-push API ------------------------------------
    def __call__(self, inputs):
        inputs = jnp.asarray(inputs, jnp.float32)
        if inputs.shape != (self.input_size,):
            raise ValueError(
                f'expected input to have size ({self.input_size},), '
                f'got {tuple(inputs.shape)}')
        assert self._states_hist
        return self.push_many(inputs[None, :])

    def push(self, *args, **kwargs):
        return self(*args, **kwargs)

    def pop(self):
        if len(self._states_hist) > 1:
            self._outputs_hist.pop()
            return self._split_state(self._states_hist.pop())
        raise EmptyStackError()

    @property
    def top(self):
        return self._outputs_hist[-1].squeeze() if self._outputs_hist else None

    def __len__(self):
        return len(self._outputs_hist)


if __name__ == "__main__":
    input_size, hidden_size, num_layers = 32, 32, 2
    stack = StackLSTM(input_size, hidden_size, num_layers=num_layers,
                      dropout=0.0, seed=0)

    key = jax.random.PRNGKey(0)
    k1, k2 = jax.random.split(key)
    x_single = jax.random.normal(k1, (input_size,), jnp.float32)
    x_batch = jax.random.normal(k2, (6, input_size), jnp.float32)

    h, c = stack.push(x_single)          # single push (T=1 fused kernel)
    h, c = stack.push_many(x_batch)      # 6 pushes fused into ONE pallas_call
    top = stack.top
    h_pop, c_pop = stack.pop()           # pop most recent state

    jax.block_until_ready((h, c, top, h_pop, c_pop))
    assert h.shape == (num_layers, 1, hidden_size)
    assert c.shape == (num_layers, 1, hidden_size)
    assert h_pop.shape == (num_layers, 1, hidden_size)
    assert top.shape == (hidden_size,)
    assert len(stack) == 6               # 1 + 6 pushes, 1 pop
    assert bool(jnp.all(jnp.isfinite(h))) and bool(jnp.all(jnp.isfinite(c)))
    print("KERNEL_OK")
</pallas_src>

<mosaic_0001>
module attributes {stable_mosaic.version = 11 : i64} {
  func.func @_stack_lstm_kernel(%arg0: i32, %arg1: memref<1x512xf32, #tpu.memory_space<vmem>>, %arg2: memref<1x1x128xf32, #tpu.memory_space<vmem>>, %arg3: memref<2x256x512xf32, #tpu.memory_space<vmem>>, %arg4: memref<2x1x512xf32, #tpu.memory_space<vmem>>, %arg5: memref<1x1x512xf32, #tpu.memory_space<vmem>>, %arg6: memref<1x512xf32, #tpu.memory_space<vmem>>, %arg7: memref<1x256xf32, #tpu.memory_space<vmem>>) attributes {dimension_semantics = [#tpu.dimension_semantics<arbitrary>], iteration_bounds = array<i64: 1>, scalar_prefetch = 0 : i64, scratch_operands = 2 : i64, tpu.core_type = #tpu.core_type<tc>, window_params = [{pipeline_mode = #tpu.pipeline_mode<synchronous>, transform_indices = @transform_0, window_bounds = array<i64: 1, 512>}, {transform_indices = @transform_1, window_bounds = array<i64: 1, 1, 128>}, {pipeline_mode = #tpu.pipeline_mode<synchronous>, transform_indices = @transform_2, window_bounds = array<i64: 2, 256, 512>}, {pipeline_mode = #tpu.pipeline_mode<synchronous>, transform_indices = @transform_3, window_bounds = array<i64: 2, 1, 512>}, {transform_indices = @transform_4, window_bounds = array<i64: 1, 1, 512>}]} {
    %c0_i32 = arith.constant 0 : i32
    %0 = arith.cmpi eq, %arg0, %c0_i32 : i32
    %1 = arith.extui %0 : i1 to i32
    %c0_i32_0 = arith.constant 0 : i32
    %2 = arith.cmpi ne, %1, %c0_i32_0 : i32
    scf.if %2 {
      %c0_51 = arith.constant 0 : index
      %c0_52 = arith.constant 0 : index
      %84 = vector.load %arg1[%c0_51, %c0_52] : memref<1x512xf32, #tpu.memory_space<vmem>>, vector<1x512xf32>
      %c0_53 = arith.constant 0 : index
      %c0_54 = arith.constant 0 : index
      %85 = vector.load %arg6[%c0_53, %c0_54] : memref<1x512xf32, #tpu.memory_space<vmem>>, vector<1x512xf32>
      tpu.vector_store %arg6[%c0_53, %c0_54], %84 {strides = array<i32>} : memref<1x512xf32, #tpu.memory_space<vmem>>, vector<1x512xf32>,
    } else {
    }
    %c0 = arith.constant 0 : index
    %c0_1 = arith.constant 0 : index
    %c0_2 = arith.constant 0 : index
    %3 = vector.load %arg2[%c0, %c0_1, %c0_2] : memref<1x1x128xf32, #tpu.memory_space<vmem>>, vector<1x1x128xf32>
    %4 = vector.shape_cast %3 : vector<1x1x128xf32> to vector<1x128xf32>
    %c0_3 = arith.constant 0 : index
    %c0_4 = arith.constant 0 : index
    %5 = vector.load %arg7[%c0_3, %c0_4] : memref<1x256xf32, #tpu.memory_space<vmem>>, vector<1x128xf32>
    tpu.vector_store %arg7[%c0_3, %c0_4], %4 {strides = array<i32>} : memref<1x256xf32, #tpu.memory_space<vmem>>, vector<1x128xf32>,
    %c0_5 = arith.constant 0 : index
    %c0_6 = arith.constant 0 : index
    %6 = vector.load %arg6[%c0_5, %c0_6] : memref<1x512xf32, #tpu.memory_space<vmem>>, vector<1x128xf32>
    %c0_7 = arith.constant 0 : index
    %c128 = arith.constant 128 : index
    %7 = vector.load %arg6[%c0_7, %c128] : memref<1x512xf32, #tpu.memory_space<vmem>>, vector<1x128xf32>
    %c0_8 = arith.constant 0 : index
    %c128_9 = arith.constant 128 : index
    %8 = vector.load %arg7[%c0_8, %c128_9] : memref<1x256xf32, #tpu.memory_space<vmem>>, vector<1x128xf32>
    tpu.vector_store %arg7[%c0_8, %c128_9], %6 {strides = array<i32>} : memref<1x256xf32, #tpu.memory_space<vmem>>, vector<1x128xf32>,
    %c0_10 = arith.constant 0 : index
    %c0_11 = arith.constant 0 : index
    %c0_12 = arith.constant 0 : index
    %9 = vector.load %arg3[%c0_10, %c0_11, %c0_12] : memref<2x256x512xf32, #tpu.memory_space<vmem>>, vector<1x256x512xf32>
    %10 = vector.shape_cast %9 : vector<1x256x512xf32> to vector<256x512xf32>
    %c0_13 = arith.constant 0 : index
    %c0_14 = arith.constant 0 : index
    %11 = vector.load %arg7[%c0_13, %c0_14] : memref<1x256xf32, #tpu.memory_space<vmem>>, vector<1x256xf32>
    %cst = arith.constant dense<0.000000e+00> : vector<1x512xf32>
    %12 = tpu.matmul %11, %10, %cst {dimension_numbers = #tpu.dot_dimension_numbers<[1], [0], [0], [1], [0, 0, 1, 1], [], []>} : vector<1x256xf32>, vector<256x512xf32>, vector<1x512xf32> -> vector<1x512xf32>
    %c0_15 = arith.constant 0 : index
    %c0_16 = arith.constant 0 : index
    %c0_17 = arith.constant 0 : index
    %13 = vector.load %arg4[%c0_15, %c0_16, %c0_17] : memref<2x1x512xf32, #tpu.memory_space<vmem>>, vector<1x1x512xf32>
    %14 = vector.shape_cast %13 : vector<1x1x512xf32> to vector<1x512xf32>
    %15 = arith.addf %12, %14 : vector<1x512xf32>
    %16 = vector.extract_strided_slice %15 {offsets = [0, 0], sizes = [1, 128], strides = [1, 1]} : vector<1x512xf32> to vector<1x128xf32>
    %17 = arith.negf %16 : vector<1x128xf32>
    %18 = math.exp %17 : vector<1x128xf32>
    %cst_18 = arith.constant 1.000000e+00 : f32
    %19 = vector.broadcast %cst_18 : f32 to vector<1x128xf32>
    %20 = arith.addf %19, %18 : vector<1x128xf32>
    %21 = arith.divf %19, %20 : vector<1x128xf32>
    %22 = vector.extract_strided_slice %15 {offsets = [0, 128], sizes = [1, 128], strides = [1, 1]} : vector<1x512xf32> to vector<1x128xf32>
    %23 = arith.negf %22 : vector<1x128xf32>
    %24 = math.exp %23 : vector<1x128xf32>
    %cst_19 = arith.constant 1.000000e+00 : f32
    %25 = vector.broadcast %cst_19 : f32 to vector<1x128xf32>
    %26 = arith.addf %25, %24 : vector<1x128xf32>
    %27 = arith.divf %25, %26 : vector<1x128xf32>
    %28 = vector.extract_strided_slice %15 {offsets = [0, 256], sizes = [1, 128], strides = [1, 1]} : vector<1x512xf32> to vector<1x128xf32>
    %29 = math.tanh %28 : vector<1x128xf32>
    %30 = vector.extract_strided_slice %15 {offsets = [0, 384], sizes = [1, 128], strides = [1, 1]} : vector<1x512xf32> to vector<1x128xf32>
    %31 = arith.negf %30 : vector<1x128xf32>
    %32 = math.exp %31 : vector<1x128xf32>
    %cst_20 = arith.constant 1.000000e+00 : f32
    %33 = vector.broadcast %cst_20 : f32 to vector<1x128xf32>
    %34 = arith.addf %33, %32 : vector<1x128xf32>
    %35 = arith.divf %33, %34 : vector<1x128xf32>
    %36 = arith.mulf %27, %7 : vector<1x128xf32>
    %37 = arith.mulf %21, %29 : vector<1x128xf32>
    %38 = arith.addf %36, %37 : vector<1x128xf32>
    %39 = math.tanh %38 : vector<1x128xf32>
    %40 = arith.mulf %35, %39 : vector<1x128xf32>
    %c0_21 = arith.constant 0 : index
    %c0_22 = arith.constant 0 : index
    %41 = vector.load %arg6[%c0_21, %c0_22] : memref<1x512xf32, #tpu.memory_space<vmem>>, vector<1x128xf32>
    tpu.vector_store %arg6[%c0_21, %c0_22], %40 {strides = array<i32>} : memref<1x512xf32, #tpu.memory_space<vmem>>, vector<1x128xf32>,
    %c0_23 = arith.constant 0 : index
    %c128_24 = arith.constant 128 : index
    %42 = vector.load %arg6[%c0_23, %c128_24] : memref<1x512xf32, #tpu.memory_space<vmem>>, vector<1x128xf32>
    tpu.vector_store %arg6[%c0_23, %c128_24], %38 {strides = array<i32>} : memref<1x512xf32, #tpu.memory_space<vmem>>, vector<1x128xf32>,
    %c0_25 = arith.constant 0 : index
    %c0_26 = arith.constant 0 : index
    %43 = vector.load %arg7[%c0_25, %c0_26] : memref<1x256xf32, #tpu.memory_space<vmem>>, vector<1x128xf32>
    tpu.vector_store %arg7[%c0_25, %c0_26], %40 {strides = array<i32>} : memref<1x256xf32, #tpu.memory_space<vmem>>, vector<1x128xf32>,
    %c0_27 = arith.constant 0 : index
    %c256 = arith.constant 256 : index
    %44 = vector.load %arg6[%c0_27, %c256] : memref<1x512xf32, #tpu.memory_space<vmem>>, vector<1x128xf32>
    %c0_28 = arith.constant 0 : index
    %c384 = arith.constant 384 : index
    %45 = vector.load %arg6[%c0_28, %c384] : memref<1x512xf32, #tpu.memory_space<vmem>>, vector<1x128xf32>
    %c0_29 = arith.constant 0 : index
    %c128_30 = arith.constant 128 : index
    %46 = vector.load %arg7[%c0_29, %c128_30] : memref<1x256xf32, #tpu.memory_space<vmem>>, vector<1x128xf32>
    tpu.vector_store %arg7[%c0_29, %c128_30], %44 {strides = array<i32>} : memref<1x256xf32, #tpu.memory_space<vmem>>, vector<1x128xf32>,
    %c1 = arith.constant 1 : index
    %c0_31 = arith.constant 0 : index
    %c0_32 = arith.constant 0 : index
    %47 = vector.load %arg3[%c1, %c0_31, %c0_32] : memref<2x256x512xf32, #tpu.memory_space<vmem>>, vector<1x256x512xf32>
    %48 = vector.shape_cast %47 : vector<1x256x512xf32> to vector<256x512xf32>
    %c0_33 = arith.constant 0 : index
    %c0_34 = arith.constant 0 : index
    %49 = vector.load %arg7[%c0_33, %c0_34] : memref<1x256xf32, #tpu.memory_space<vmem>>, vector<1x256xf32>
    %cst_35 = arith.constant dense<0.000000e+00> : vector<1x512xf32>
    %50 = tpu.matmul %49, %48, %cst_35 {dimension_numbers = #tpu.dot_dimension_numbers<[1], [0], [0], [1], [0, 0, 1, 1], [], []>} : vector<1x256xf32>, vector<256x512xf32>, vector<1x512xf32> -> vector<1x512xf32>
    %c1_36 = arith.constant 1 : index
    %c0_37 = arith.constant 0 : index
    %c0_38 = arith.constant 0 : index
    %51 = vector.load %arg4[%c1_36, %c0_37, %c0_38] : memref<2x1x512xf32, #tpu.memory_space<vmem>>, vector<1x1x512xf32>
    %52 = vector.shape_cast %51 : vector<1x1x512xf32> to vector<1x512xf32>
    %53 = arith.addf %50, %52 : vector<1x512xf32>
    %54 = vector.extract_strided_slice %53 {offsets = [0, 0], sizes = [1, 128], strides = [1, 1]} : vector<1x512xf32> to vector<1x128xf32>
    %55 = arith.negf %54 : vector<1x128xf32>
    %56 = math.exp %55 : vector<1x128xf32>
    %cst_39 = arith.constant 1.000000e+00 : f32
    %57 = vector.broadcast %cst_39 : f32 to vector<1x128xf32>
    %58 = arith.addf %57, %56 : vector<1x128xf32>
    %59 = arith.divf %57, %58 : vector<1x128xf32>
    %60 = vector.extract_strided_slice %53 {offsets = [0, 128], sizes = [1, 128], strides = [1, 1]} : vector<1x512xf32> to vector<1x128xf32>
    %61 = arith.negf %60 : vector<1x128xf32>
    %62 = math.exp %61 : vector<1x128xf32>
    %cst_40 = arith.constant 1.000000e+00 : f32
    %63 = vector.broadcast %cst_40 : f32 to vector<1x128xf32>
    %64 = arith.addf %63, %62 : vector<1x128xf32>
    %65 = arith.divf %63, %64 : vector<1x128xf32>
    %66 = vector.extract_strided_slice %53 {offsets = [0, 256], sizes = [1, 128], strides = [1, 1]} : vector<1x512xf32> to vector<1x128xf32>
    %67 = math.tanh %66 : vector<1x128xf32>
    %68 = vector.extract_strided_slice %53 {offsets = [0, 384], sizes = [1, 128], strides = [1, 1]} : vector<1x512xf32> to vector<1x128xf32>
    %69 = arith.negf %68 : vector<1x128xf32>
    %70 = math.exp %69 : vector<1x128xf32>
    %cst_41 = arith.constant 1.000000e+00 : f32
    %71 = vector.broadcast %cst_41 : f32 to vector<1x128xf32>
    %72 = arith.addf %71, %70 : vector<1x128xf32>
    %73 = arith.divf %71, %72 : vector<1x128xf32>
    %74 = arith.mulf %65, %45 : vector<1x128xf32>
    %75 = arith.mulf %59, %67 : vector<1x128xf32>
    %76 = arith.addf %74, %75 : vector<1x128xf32>
    %77 = math.tanh %76 : vector<1x128xf32>
    %78 = arith.mulf %73, %77 : vector<1x128xf32>
    %c0_42 = arith.constant 0 : index
    %c256_43 = arith.constant 256 : index
    %79 = vector.load %arg6[%c0_42, %c256_43] : memref<1x512xf32, #tpu.memory_space<vmem>>, vector<1x128xf32>
    tpu.vector_store %arg6[%c0_42, %c256_43], %78 {strides = array<i32>} : memref<1x512xf32, #tpu.memory_space<vmem>>, vector<1x128xf32>,
    %c0_44 = arith.constant 0 : index
    %c384_45 = arith.constant 384 : index
    %80 = vector.load %arg6[%c0_44, %c384_45] : memref<1x512xf32, #tpu.memory_space<vmem>>, vector<1x128xf32>
    tpu.vector_store %arg6[%c0_44, %c384_45], %76 {strides = array<i32>} : memref<1x512xf32, #tpu.memory_space<vmem>>, vector<1x128xf32>,
    %c0_46 = arith.constant 0 : index
    %c0_47 = arith.constant 0 : index
    %81 = vector.load %arg6[%c0_46, %c0_47] : memref<1x512xf32, #tpu.memory_space<vmem>>, vector<1x512xf32>
    %82 = vector.shape_cast %81 : vector<1x512xf32> to vector<1x1x512xf32>
    %c0_48 = arith.constant 0 : index
    %c0_49 = arith.constant 0 : index
    %c0_50 = arith.constant 0 : index
    %83 = vector.load %arg5[%c0_48, %c0_49, %c0_50] : memref<1x1x512xf32, #tpu.memory_space<vmem>>, vector<1x1x512xf32>
    tpu.vector_store %arg5[%c0_48, %c0_49, %c0_50], %82 {strides = array<i32>} : memref<1x1x512xf32, #tpu.memory_space<vmem>>, vector<1x1x512xf32>,
    return
  }
  func.func @transform_0(%arg0: i32) -> (i32, i32) {
    %c0_i32 = arith.constant 0 : i32
    %c0_i32_0 = arith.constant 0 : i32
    %c0_i32_1 = arith.constant 0 : i32
    return %c0_i32, %c0_i32_0 : i32, i32
  }
  func.func @transform_1(%arg0: i32) -> (i32, i32, i32) {
    %c0_i32 = arith.constant 0 : i32
    %c0_i32_0 = arith.constant 0 : i32
    %c0_i32_1 = arith.constant 0 : i32
    return %arg0, %c0_i32, %c0_i32_0 : i32, i32, i32
  }
  func.func @transform_2(%arg0: i32) -> (i32, i32, i32) {
    %c0_i32 = arith.constant 0 : i32
    %c0_i32_0 = arith.constant 0 : i32
    %c0_i32_1 = arith.constant 0 : i32
    %c0_i32_2 = arith.constant 0 : i32
    return %c0_i32, %c0_i32_0, %c0_i32_1 : i32, i32, i32
  }
  func.func @transform_3(%arg0: i32) -> (i32, i32, i32) {
    %c0_i32 = arith.constant 0 : i32
    %c0_i32_0 = arith.constant 0 : i32
    %c0_i32_1 = arith.constant 0 : i32
    %c0_i32_2 = arith.constant 0 : i32
    return %c0_i32, %c0_i32_0, %c0_i32_1 : i32, i32, i32
  }
  func.func @transform_4(%arg0: i32) -> (i32, i32, i32) {
    %c0_i32 = arith.constant 0 : i32
    %c0_i32_0 = arith.constant 0 : i32
    %c0_i32_1 = arith.constant 0 : i32
    return %arg0, %c0_i32, %c0_i32_0 : i32, i32, i32
  }
}

</mosaic_0001>

<bundles_post_ra>
// kernel: _stack_lstm_run.1
= control target key start
LH: loop header
LB: loop body
LE: loop exit
PB: predicated region body
PF: predicated region fallthrough
CT: control target
= control target key end

     0   :  { %9 = vsyncpa [#allocation5], 0  ;;  %s1289_s0 = inlined_call_operand.hbm [shape: f32[1,512], index: 0, kind: input, shape index: {}]   ;;  %s1290_s1 = inlined_call_operand.hbm [shape: f32[1,1,128], index: 1, kind: input, shape index: {}]   ;;  %s1291_s2 = inlined_call_operand.hbm [shape: f32[2,256,512], index: 2, kind: input, shape index: {}]   ;;  %s1292_s3 = inlined_call_operand.vmem [shape: f32[2,1,512], index: 3, kind: input, shape index: {}]   ;;  %s1293_s4 = inlined_call_operand.hbm [shape: f32[1,1,512], index: 4, kind: output, shape index: {}]  }
   0x1   :  { %10 = vsyncpa [#allocation8], 0 }
   0x2   :  { %11 = vsyncpa [#allocation6], 0  ;;  %s1155_s15 = smov [#allocation7]   ;;  %s1156_s17 = smov [#allocation4]  }
   0x3   :  { %s28_s16 = sshll.u32 %s1155_s15, 4  ;;  %s18_s18 = sshll.u32 %s1156_s17, 4  ;;  %s29_s16 = int_to_ptr.vmem [resolvable:$true] %s28_s16  ;;  %s19_s18 = int_to_ptr.vmem [resolvable:$true] %s18_s18 }
   0x4   :  { %s1061_s21 = scalar_lea.hbm %s1290_s1, 16 }
   0x5   :  { %p1062_p0 = scmp.ne.s32.totalorder %s1290_s1, %s1061_s21  ;;  %p1065_p1 = scmp.lt.u32.totalorder %s1061_s21, %s1290_s1 }
   0x7   :  { %p1067_p2 = pnand %p1065_p1, %p1062_p0 }
   0x9   :  { %1070 = shalt.err (!%p1067_p2)
}
   0xa   :  { %s1071_s26 = scalar_lea.vmem %s29_s16, 16  ;;  %s1075_s27 = scalar_lea.vmem %s29_s16, 32 }
   0xb   :  { %p1072_p3 = scmp.ne.s32.totalorder %s29_s16, %s1071_s26  ;;  %p1076_p4 = scmp.lt.s32.totalorder %s29_s16, %s29_s16 }
   0xc   :  { %p1077_p5 = scmp.lt.s32.totalorder %s1075_s27, %s1071_s26 }
   0xe   :  { %p1078_p6 = por %p1077_p5, %p1076_p4 }
  0x10   :  { %p1079_p7 = pnand %p1078_p6, %p1072_p3 }
  0x12   :  { %1082 = shalt.err (!%p1079_p7)
}
  0x13   :  { %31 = dma.hbm_to_vmem [thread:$0]  %s1290_s1, 16, %s29_s16, [#allocation8]  }
  0x14   :  { %s1083_s6 = scalar_lea.hbm %s1289_s0, 64 }
  0x15   :  { %p1084_p8 = scmp.ne.s32.totalorder %s1289_s0, %s1083_s6  ;;  %p1087_p9 = scmp.lt.u32.totalorder %s1083_s6, %s1289_s0 }
  0x17   :  { %p1089_p10 = pnand %p1087_p9, %p1084_p8 }
  0x19   :  { %1092 = shalt.err (!%p1089_p10)
}
  0x1a   :  { %s1093_s11 = scalar_lea.vmem %s19_s18, 64  ;;  %p1098_p12 = scmp.lt.s32.totalorder %s19_s18, %s19_s18 }
  0x1b   :  { %p1094_p11 = scmp.ne.s32.totalorder %s19_s18, %s1093_s11  ;;  %p1099_p13 = scmp.lt.s32.totalorder %s1093_s11, %s1093_s11 }
  0x1d   :  { %p1100_p0 = por %p1099_p13, %p1098_p12 }
  0x1f   :  { %p1101_p1 = pnand %p1100_p0, %p1094_p11 }
  0x21   :  { %1104 = shalt.err (!%p1101_p1)
}
  0x22   :  { %21 = dma.hbm_to_vmem [thread:$0]  %s1289_s0, 64, %s19_s18, [#allocation5]  }
  0x23   :  { %s1157_s13 = smov [#allocation9]   ;;  %s1105_s17 = scalar_lea.hbm %s1291_s2, 32768 }
  0x24   :  { %s37_s14 = sshll.u32 %s1157_s13, 4  ;;  %p1106_p2 = scmp.ne.s32.totalorder %s1291_s2, %s1105_s17  ;;  %s38_s14 = int_to_ptr.vmem [resolvable:$true] %s37_s14 }
  0x25   :  { %p1109_p3 = scmp.lt.u32.totalorder %s1105_s17, %s1291_s2 }
  0x27   :  { %p1111_p4 = pnand %p1109_p3, %p1106_p2 }
  0x29   :  { %1114 = shalt.err (!%p1111_p4)
}
  0x2a   :  { %s1115_s23 = scalar_lea.vmem %s38_s14, 32768  ;;  %p1120_p6 = scmp.lt.s32.totalorder %s38_s14, %s38_s14 }
  0x2b   :  { %p1116_p5 = scmp.ne.s32.totalorder %s38_s14, %s1115_s23  ;;  %p1121_p7 = scmp.lt.s32.totalorder %s1115_s23, %s1115_s23 }
  0x2d   :  { %p1122_p8 = por %p1121_p7, %p1120_p6 }
  0x2f   :  { %p1123_p9 = pnand %p1122_p8, %p1116_p5 }
  0x31   :  { %1126 = shalt.err (!%p1123_p9)
}
  0x32   :  { %s1158_s0 = smov 512   ;;  %s1159_s18 = smov 32  }
  0x33   :  { %43 = dma.hbm_to_vmem [thread:$0]  %s1291_s2, 32768, %s38_s14, [#allocation8], %s1158_s0, %s1158_s0, %s1159_s18  }
  0x34   :  { %1149 = dma.done.wait [#allocation5], 64  }
  0x35   :  { %1150 = vsyncadd [#allocation5], 4294967232 }
  0x36   :  { %1151 = dma.done.wait [#allocation8], 32784  }
  0x37   :  { %1152 = vsyncadd [#allocation8], 4294934512  ;;  %v75_v0 = vld [vmem:[#allocation9 + $0x8] sm:$0xff]  ;;  %v74_v2 = vld [vmem:[#allocation9] sm:$0xff] }
  0x38   :  { %v79_v1 = vld [vmem:[#allocation9 + $0x28] sm:$0xff]  ;;  %v78_v4 = vld [vmem:[#allocation9 + $0x20] sm:$0xff]  ;;  %v77_v18 = vld [vmem:[#allocation9 + $0x18] sm:$0xff] }
  0x39   :  { %v767_v3 = vpack.c.bf16 %v79_v1, %v75_v0  ;;  %v83_v5 = vld [vmem:[#allocation9 + $0x48] sm:$0xff]  ;;  %v769_v7 = vpack.c.bf16 %v78_v4, %v74_v2  ;;  %v82_v9 = vld [vmem:[#allocation9 + $0x40] sm:$0xff]  ;;  %v81_v19 = vld [vmem:[#allocation9 + $0x38] sm:$0xff] }
  0x3a   :  { %v87_v6 = vld [vmem:[#allocation9 + $0x68] sm:$0xff]  ;;  %v86_v10 = vld [vmem:[#allocation9 + $0x60] sm:$0xff]  ;;  %v831_v21 = vpack.c.bf16 %v81_v19, %v77_v18  ;;  %v76_v22 = vld [vmem:[#allocation9 + $0x10] sm:$0xff] }
  0x3b   :  { %v771_v8 = vpack.c.bf16 %v87_v6, %v83_v5  ;;  %v91_v11 = vld [vmem:[#allocation9 + $0x88] sm:$0xff]  ;;  %768 = vmatprep.subr.bf16.mxu0 %v767_v3  ;;  %v773_v13 = vpack.c.bf16 %v86_v10, %v82_v9  ;;  %v90_v14 = vld [vmem:[#allocation9 + $0x80] sm:$0xff]  ;;  %v80_v23 = vld [vmem:[#allocation9 + $0x30] sm:$0xff] }
  0x3c   :  { %v95_v12 = vld [vmem:[#allocation9 + $0xa8] sm:$0xff]  ;;  %770 = vmatpush1.bf16.msra.mxu0 %v769_v7  ;;  %v94_v15 = vld [vmem:[#allocation9 + $0xa0] sm:$0xff]  ;;  %v833_v24 = vpack.c.bf16 %v80_v23, %v76_v22  ;;  %832 = vmatprep.subr.bf16.mxu1 %v831_v21  ;;  %v85_v26 = vld [vmem:[#allocation9 + $0x58] sm:$0xff] }
  0x3d   :  { %772 = vmatprep.subr.bf16.mxu0 %v771_v8  ;;  %v775_v16 = vpack.c.bf16 %v95_v12, %v91_v11  ;;  %v99_v17 = vld [vmem:[#allocation9 + $0xc8] sm:$0xff]  ;;  %v777_v25 = vpack.c.bf16 %v94_v15, %v90_v14  ;;  %v89_v27 = vld [vmem:[#allocation9 + $0x78] sm:$0xff]  ;;  %v84_v28 = vld [vmem:[#allocation9 + $0x50] sm:$0xff] }
  0x3e   :  { %v103_v20 = vld [vmem:[#allocation9 + $0xe8] sm:$0xff]  ;;  %v98_v30 = vld [vmem:[#allocation9 + $0xc0] sm:$0xff]  ;;  %834 = vmatpush1.bf16.msra.mxu1 %v833_v24  ;;  %v835_v32 = vpack.c.bf16 %v89_v27, %v85_v26  ;;  %v88_v33 = vld [vmem:[#allocation9 + $0x70] sm:$0xff] }
  0x3f   :  { %v779_v29 = vpack.c.bf16 %v103_v20, %v99_v17  ;;  %v102_v31 = vld [vmem:[#allocation9 + $0xe0] sm:$0xff]  ;;  %v107_v34 = vld [vmem:[#allocation9 + $0x108] sm:$0xff]  ;;  %v837_v36 = vpack.c.bf16 %v88_v33, %v84_v28  ;;  %v93_v37 = vld [vmem:[#allocation9 + $0x98] sm:$0xff] }
  0x40   :  { %774 = vmatpush1.bf16.msra.mxu0 %v773_v13  ;;  %v111_v35 = vld [vmem:[#allocation9 + $0x128] sm:$0xff]  ;;  %836 = vmatprep.subr.bf16.mxu1 %v835_v32  ;;  %v97_v38 = vld [vmem:[#allocation9 + $0xb8] sm:$0xff]  ;;  %v92_v39 = vld [vmem:[#allocation9 + $0x90] sm:$0xff]  ;;  %v781_v41 = vpack.c.bf16 %v102_v31, %v98_v30 }
  0x41   :  { %776 = vmatprep.subr.bf16.mxu0 %v775_v16  ;;  %v96_v40 = vld [vmem:[#allocation9 + $0xb0] sm:$0xff]  ;;  %v106_v42 = vld [vmem:[#allocation9 + $0x100] sm:$0xff]  ;;  %v839_v44 = vpack.c.bf16 %v97_v38, %v93_v37  ;;  %v783_v45 = vpack.c.bf16 %v111_v35, %v107_v34  ;;  %v115_v46 = vld [vmem:[#allocation9 + $0x148] sm:$0xff] }
  0x42   :  { %v110_v43 = vld [vmem:[#allocation9 + $0x120] sm:$0xff]  ;;  %838 = vmatpush1.bf16.msra.mxu1 %v837_v36  ;;  %v841_v47 = vpack.c.bf16 %v96_v40, %v92_v39  ;;  %v101_v48 = vld [vmem:[#allocation9 + $0xd8] sm:$0xff]  ;;  %v119_v50 = vld [vmem:[#allocation9 + $0x168] sm:$0xff] }
  0x43   :  { %v105_v49 = vld [vmem:[#allocation9 + $0xf8] sm:$0xff]  ;;  %840 = vmatprep.subr.bf16.mxu1 %v839_v44  ;;  %v100_v52 = vld [vmem:[#allocation9 + $0xd0] sm:$0xff]  ;;  %v785_v54 = vpack.c.bf16 %v110_v43, %v106_v42  ;;  %v787_v57 = vpack.c.bf16 %v119_v50, %v115_v46  ;;  %v114_v58 = vld [vmem:[#allocation9 + $0x140] sm:$0xff] }
  0x44   :  { %778 = vmatpush1.bf16.msra.mxu0 %v777_v25  ;;  %v843_v51 = vpack.c.bf16 %v105_v49, %v101_v48  ;;  %v104_v53 = vld [vmem:[#allocation9 + $0xf0] sm:$0xff]  ;;  %v109_v55 = vld [vmem:[#allocation9 + $0x118] sm:$0xff]  ;;  %v118_v59 = vld [vmem:[#allocation9 + $0x160] sm:$0xff] }
  0x45   :  { %780 = vmatprep.subr.bf16.mxu0 %v779_v29  ;;  %v113_v56 = vld [vmem:[#allocation9 + $0x138] sm:$0xff]  ;;  %v123_v60 = vld [vmem:[#allocation9 + $0x188] sm:$0xff]  ;;  %v845_v61 = vpack.c.bf16 %v104_v53, %v100_v52  ;;  %v108_v0 = vld [vmem:[#allocation9 + $0x110] sm:$0xff]  ;;  %v789_v4 = vpack.c.bf16 %v118_v59, %v114_v58 }
  0x46   :  { %842 = vmatpush1.bf16.msra.mxu1 %v841_v47  ;;  %v127_v62 = vld [vmem:[#allocation9 + $0x1a8] sm:$0xff]  ;;  %v847_v63 = vpack.c.bf16 %v113_v56, %v109_v55  ;;  %v112_v1 = vld [vmem:[#allocation9 + $0x130] sm:$0xff]  ;;  %v117_v2 = vld [vmem:[#allocation9 + $0x158] sm:$0xff] }
  0x47   :  { %844 = vmatprep.subr.bf16.mxu1 %v843_v51  ;;  %v121_v3 = vld [vmem:[#allocation9 + $0x178] sm:$0xff]  ;;  %v791_v5 = vpack.c.bf16 %v127_v62, %v123_v60  ;;  %v122_v6 = vld [vmem:[#allocation9 + $0x180] sm:$0xff]  ;;  %v131_v8 = vld [vmem:[#allocation9 + $0x1c8] sm:$0xff]  ;;  %v849_v9 = vpack.c.bf16 %v112_v1, %v108_v0 }
  0x48   :  { %782 = vmatpush1.bf16.msra.mxu0 %v781_v41  ;;  %v126_v7 = vld [vmem:[#allocation9 + $0x1a0] sm:$0xff]  ;;  %v135_v10 = vld [vmem:[#allocation9 + $0x1e8] sm:$0xff]  ;;  %v851_v11 = vpack.c.bf16 %v121_v3, %v117_v2  ;;  %v116_v12 = vld [vmem:[#allocation9 + $0x150] sm:$0xff]  ;;  %v60_v41 = vlaneseq }
  0x49   :  { %784 = vmatprep.subr.bf16.mxu0 %v783_v45  ;;  %v120_v13 = vld [vmem:[#allocation9 + $0x170] sm:$0xff]  ;;  %v125_v14 = vld [vmem:[#allocation9 + $0x198] sm:$0xff]  ;;  %v793_v16 = vpack.c.bf16 %v126_v7, %v122_v6  ;;  %v795_v17 = vpack.c.bf16 %v135_v10, %v131_v8  ;;  %v130_v18 = vld [vmem:[#allocation9 + $0x1c0] sm:$0xff] }
  0x4a   :  { %846 = vmatpush1.bf16.msra.mxu1 %v845_v61  ;;  %v129_v15 = vld [vmem:[#allocation9 + $0x1b8] sm:$0xff]  ;;  %v134_v19 = vld [vmem:[#allocation9 + $0x1e0] sm:$0xff]  ;;  %v139_v20 = vld [vmem:[#allocation9 + $0x208] sm:$0xff]  ;;  %v853_v21 = vpack.c.bf16 %v120_v13, %v116_v12  ;;  %vm1223_vm0 = vcmp.lt.s32.totalorder %v60_v41, 512  ;;  %vm1228_vm1 = vcmp.lt.s32.totalorder %v60_v41, 128 }
  0x4b   :  { %848 = vmatprep.subr.bf16.mxu1 %v847_v63  ;;  %v143_v22 = vld [vmem:[#allocation9 + $0x228] sm:$0xff]  ;;  %v855_v23 = vpack.c.bf16 %v129_v15, %v125_v14  ;;  %v124_v24 = vld [vmem:[#allocation9 + $0x190] sm:$0xff]  ;;  %v133_v26 = vld [vmem:[#allocation9 + $0x1d8] sm:$0xff]  ;;  %v797_v28 = vpack.c.bf16 %v134_v19, %v130_v18 }
  0x4c   :  { %786 = vmatpush1.bf16.msra.mxu0 %v785_v54  ;;  %v128_v25 = vld [vmem:[#allocation9 + $0x1b0] sm:$0xff]  ;;  %v137_v27 = vld [vmem:[#allocation9 + $0x1f8] sm:$0xff]  ;;  %v799_v29 = vpack.c.bf16 %v143_v22, %v139_v20  ;;  %v138_v30 = vld [vmem:[#allocation9 + $0x200] sm:$0xff] }
  0x4d   :  { %788 = vmatprep.subr.bf16.mxu0 %v787_v57  ;;  %v142_v31 = vld [vmem:[#allocation9 + $0x220] sm:$0xff]  ;;  %v147_v32 = vld [vmem:[#allocation9 + $0x248] sm:$0xff]  ;;  %v857_v33 = vpack.c.bf16 %v128_v25, %v124_v24  ;;  %v859_v35 = vpack.c.bf16 %v137_v27, %v133_v26  ;;  %v132_v36 = vld [vmem:[#allocation9 + $0x1d0] sm:$0xff] }
  0x4e   :  { %850 = vmatpush1.bf16.msra.mxu1 %v849_v9  ;;  %v151_v34 = vld [vmem:[#allocation9 + $0x268] sm:$0xff]  ;;  %v136_v37 = vld [vmem:[#allocation9 + $0x1f0] sm:$0xff]  ;;  %v141_v38 = vld [vmem:[#allocation9 + $0x218] sm:$0xff]  ;;  %v801_v40 = vpack.c.bf16 %v142_v31, %v138_v30  ;;  %v1239_v30 = vshrl.u32 %v60_v41, 7 }
  0x4f   :  { %852 = vmatprep.subr.bf16.mxu1 %v851_v11  ;;  %v145_v39 = vld [vmem:[#allocation9 + $0x238] sm:$0xff]  ;;  %v803_v42 = vpack.c.bf16 %v151_v34, %v147_v32  ;;  %v146_v43 = vld [vmem:[#allocation9 + $0x240] sm:$0xff]  ;;  %v155_v45 = vld [vmem:[#allocation9 + $0x288] sm:$0xff]  ;;  %v861_v46 = vpack.c.bf16 %v136_v37, %v132_v36 }
  0x50   :  { %790 = vmatpush1.bf16.msra.mxu0 %v789_v4  ;;  %v150_v44 = vld [vmem:[#allocation9 + $0x260] sm:$0xff]  ;;  %v159_v47 = vld [vmem:[#allocation9 + $0x2a8] sm:$0xff]  ;;  %v863_v48 = vpack.c.bf16 %v145_v39, %v141_v38  ;;  %v140_v49 = vld [vmem:[#allocation9 + $0x210] sm:$0xff]  ;;  %v1242_v39 = vsub.s32 1, %v1239_v30 }
  0x51   :  { %792 = vmatprep.subr.bf16.mxu0 %v791_v5  ;;  %v144_v50 = vld [vmem:[#allocation9 + $0x230] sm:$0xff]  ;;  %v149_v51 = vld [vmem:[#allocation9 + $0x258] sm:$0xff]  ;;  %v805_v53 = vpack.c.bf16 %v150_v44, %v146_v43  ;;  %v154_v54 = vld [vmem:[#allocation9 + $0x280] sm:$0xff]  ;;  %v807_v58 = vpack.c.bf16 %v159_v47, %v155_v45 }
  0x52   :  { %854 = vmatpush1.bf16.msra.mxu1 %v853_v21  ;;  %v153_v52 = vld [vmem:[#allocation9 + $0x278] sm:$0xff]  ;;  %v158_v55 = vld [vmem:[#allocation9 + $0x2a0] sm:$0xff]  ;;  %v163_v59 = vld [vmem:[#allocation9 + $0x2c8] sm:$0xff]  ;;  %v865_v61 = vpack.c.bf16 %v144_v50, %v140_v49 }
  0x53   :  { %856 = vmatprep.subr.bf16.mxu1 %v855_v23  ;;  %v167_v60 = vld [vmem:[#allocation9 + $0x2e8] sm:$0xff]  ;;  %v148_v62 = vld [vmem:[#allocation9 + $0x250] sm:$0xff]  ;;  %v867_v63 = vpack.c.bf16 %v153_v52, %v149_v51  ;;  %v59_v1 = vld [vmem:[#allocation4] sm:$0xf]  ;;  %v809_v5 = vpack.c.bf16 %v158_v55, %v154_v54 }
  0x54   :  { %794 = vmatpush1.bf16.msra.mxu0 %v793_v16  ;;  %v152_v0 = vld [vmem:[#allocation9 + $0x270] sm:$0xff]  ;;  %v65_v2 = vld [vmem:[#allocation7] sm:$0x1]  ;;  %64 = vst.msk [vmem:[#allocation2] sm:$0xf] %vm1223_vm0, %v59_v1  ;;  %v811_v6 = vpack.c.bf16 %v167_v60, %v163_v59  ;;  %v162_v7 = vld [vmem:[#allocation9 + $0x2c0] sm:$0xff] }
  0x55   :  { %796 = vmatprep.subr.bf16.mxu0 %v795_v17  ;;  %v157_v3 = vld [vmem:[#allocation9 + $0x298] sm:$0xff]  ;;  %70 = vst.msk [vmem:[#allocation3] sm:$0x1] %vm1228_vm1, %v65_v2  ;;  %v166_v8 = vld [vmem:[#allocation9 + $0x2e0] sm:$0xff]  ;;  %v171_v9 = vld [vmem:[#allocation9 + $0x308] sm:$0xff]  ;;  %v869_v10 = vpack.c.bf16 %v152_v0, %v148_v62 }
  0x56   :  { %858 = vmatpush1.bf16.msra.mxu1 %v857_v33  ;;  %v161_v4 = vld [vmem:[#allocation9 + $0x2b8] sm:$0xff]  ;;  %v175_v11 = vld [vmem:[#allocation9 + $0x328] sm:$0xff]  ;;  %v156_v13 = vld [vmem:[#allocation9 + $0x290] sm:$0xff]  ;;  %v813_v17 = vpack.c.bf16 %v166_v8, %v162_v7 }
  0x57   :  { %860 = vmatprep.subr.bf16.mxu1 %v859_v35  ;;  %v871_v12 = vpack.c.bf16 %v161_v4, %v157_v3  ;;  %v160_v14 = vld [vmem:[#allocation9 + $0x2b0] sm:$0xff]  ;;  %v165_v15 = vld [vmem:[#allocation9 + $0x2d8] sm:$0xff]  ;;  %v170_v18 = vld [vmem:[#allocation9 + $0x300] sm:$0xff]  ;;  %v815_v19 = vpack.c.bf16 %v175_v11, %v171_v9  ;;  %v1248_v4 = vsub.s32 0, %v1239_v30 }
  0x58   :  { %798 = vmatpush1.bf16.msra.mxu0 %v797_v28  ;;  %v169_v16 = vld [vmem:[#allocation9 + $0x2f8] sm:$0xff]  ;;  %v174_v20 = vld [vmem:[#allocation9 + $0x320] sm:$0xff]  ;;  %v179_v21 = vld [vmem:[#allocation9 + $0x348] sm:$0xff]  ;;  %v873_v23 = vpack.c.bf16 %v160_v14, %v156_v13 }
  0x59   :  { %800 = vmatprep.subr.bf16.mxu0 %v799_v29  ;;  %v183_v22 = vld [vmem:[#allocation9 + $0x368] sm:$0xff]  ;;  %v875_v24 = vpack.c.bf16 %v169_v16, %v165_v15  ;;  %v164_v25 = vld [vmem:[#allocation9 + $0x2d0] sm:$0xff]  ;;  %v173_v28 = vld [vmem:[#allocation9 + $0x318] sm:$0xff]  ;;  %v817_v31 = vpack.c.bf16 %v174_v20, %v170_v18 }
  0x5a   :  { %862 = vmatpush1.bf16.msra.mxu1 %v861_v46  ;;  %v168_v26 = vld [vmem:[#allocation9 + $0x2f0] sm:$0xff]  ;;  %v177_v29 = vld [vmem:[#allocation9 + $0x338] sm:$0xff]  ;;  %v819_v32 = vpack.c.bf16 %v183_v22, %v179_v21  ;;  %v178_v33 = vld [vmem:[#allocation9 + $0x340] sm:$0xff] }
  0x5b   :  { %864 = vmatprep.subr.bf16.mxu1 %v863_v48  ;;  %v71_v27 = vld [vmem:[#allocation2] sm:$0x1]  ;;  %v182_v34 = vld [vmem:[#allocation9 + $0x360] sm:$0xff]  ;;  %v877_v35 = vpack.c.bf16 %v168_v26, %v164_v25  ;;  %v187_v36 = vld [vmem:[#allocation9 + $0x388] sm:$0xff]  ;;  %v879_v38 = vpack.c.bf16 %v177_v29, %v173_v28 }
  0x5c   :  { %802 = vmatpush1.bf16.msra.mxu0 %v801_v40  ;;  %73 = vst.msk [vmem:[#allocation3 + $0x1] sm:$0x1] %vm1228_vm1, %v71_v27  ;;  %v191_v37 = vld [vmem:[#allocation9 + $0x3a8] sm:$0xff]  ;;  %v172_v40 = vld [vmem:[#allocation9 + $0x310] sm:$0xff]  ;;  %v821_v41 = vpack.c.bf16 %v182_v34, %v178_v33  ;;  %v181_v44 = vld [vmem:[#allocation9 + $0x358] sm:$0xff] }
  0x5d   :  { %804 = vmatprep.subr.bf16.mxu0 %v803_v42  ;;  %v176_v42 = vld [vmem:[#allocation9 + $0x330] sm:$0xff]  ;;  %v185_v45 = vld [vmem:[#allocation9 + $0x378] sm:$0xff]  ;;  %v823_v46 = vpack.c.bf16 %v191_v37, %v187_v36  ;;  %v186_v47 = vld [vmem:[#allocation9 + $0x380] sm:$0xff] }
  0x5e   :  { %866 = vmatpush1.bf16.msra.mxu1 %v865_v61  ;;  %v405_v43 = vld [vmem:[#allocation2 + $0x2] sm:$0x1]  ;;  %v190_v48 = vld [vmem:[#allocation9 + $0x3a0] sm:$0xff]  ;;  %v195_v49 = vld [vmem:[#allocation9 + $0x3c8] sm:$0xff]  ;;  %v881_v52 = vpack.c.bf16 %v176_v42, %v172_v40  ;;  %v883_v54 = vpack.c.bf16 %v185_v45, %v181_v44 }
  0x5f   :  { %868 = vmatprep.subr.bf16.mxu1 %v867_v63  ;;  %v199_v50 = vld [vmem:[#allocation9 + $0x3e8] sm:$0xff]  ;;  %v180_v55 = vld [vmem:[#allocation9 + $0x350] sm:$0xff]  ;;  %v825_v59 = vpack.c.bf16 %v190_v48, %v186_v47  ;;  %v189_v60 = vld [vmem:[#allocation9 + $0x398] sm:$0xff] }
  0x60   :  { %806 = vmatpush1.bf16.msra.mxu0 %v805_v53  ;;  %v193_v61 = vld [vmem:[#allocation9 + $0x3b8] sm:$0xff]  ;;  %v827_v62 = vpack.c.bf16 %v199_v50, %v195_v49  ;;  %v194_v63 = vld [vmem:[#allocation9 + $0x3c0] sm:$0xff]  ;;  %v410_v2 = vld [vmem:[#allocation9 + $0x408] sm:$0xff] }
  0x61   :  { %808 = vmatprep.subr.bf16.mxu0 %v807_v58  ;;  %v184_v58 = vld [vmem:[#allocation9 + $0x370] sm:$0xff]  ;;  %v198_v0 = vld [vmem:[#allocation9 + $0x3e0] sm:$0xff]  ;;  %v414_v3 = vld [vmem:[#allocation9 + $0x428] sm:$0xff] }
  0x62   :  { %870 = vmatpush1.bf16.msra.mxu1 %v869_v10  ;;  %v885_v1 = vpack.c.bf16 %v184_v58, %v180_v55  ;;  %v192_v7 = vld [vmem:[#allocation9 + $0x3b0] sm:$0xff]  ;;  %v829_v8 = vpack.c.bf16 %v198_v0, %v194_v63  ;;  %v197_v9 = vld [vmem:[#allocation9 + $0x3d8] sm:$0xff]  ;;  %v895_v11 = vpack.c.bf16 %v414_v3, %v410_v2  ;;  %v413_v13 = vld [vmem:[#allocation9 + $0x420] sm:$0xff] }
  0x63   :  { %872 = vmatprep.subr.bf16.mxu1 %v871_v12  ;;  %v202_v51 = vld [vmem:[#allocation3] sm:$0x3]  ;;  %v409_v12 = vld [vmem:[#allocation9 + $0x400] sm:$0xff]  ;;  %v418_v15 = vld [vmem:[#allocation9 + $0x448] sm:$0xff] }
  0x64   :  { %810 = vmatpush1.bf16.msra.mxu0 %v809_v5  ;;  %v212_v53 = vrot.slane %v202_v51, %v1242_v39  ;;  %407 = vst.msk [vmem:[#allocation3 + $0x1] sm:$0x1] %vm1228_vm1, %v405_v43  ;;  %v887_v5 = vpack.c.bf16 %v193_v61, %v189_v60  ;;  %v201_v10 = vld [vmem:[#allocation9 + $0x3f8] sm:$0xff]  ;;  %v422_v16 = vld [vmem:[#allocation9 + $0x468] sm:$0xff]  ;;  %v200_v20 = vld [vmem:[#allocation9 + $0x3f0] sm:$0xff] }
  0x65   :  { %812 = vmatprep.subr.bf16.mxu0 %v811_v6  ;;  %v188_v6 = vld [vmem:[#allocation9 + $0x390] sm:$0xff]  ;;  %v891_v18 = vpack.c.bf16 %v201_v10, %v197_v9  ;;  %v412_v21 = vld [vmem:[#allocation9 + $0x418] sm:$0xff]  ;;  %v417_v25 = vld [vmem:[#allocation9 + $0x440] sm:$0xff] }
  0x66   :  { %874 = vmatpush1.bf16.msra.mxu1 %v873_v23  ;;  %300 = vmatprep.mubr.f32.mxu0 %v212_v53  ;;  %v889_v14 = vpack.c.bf16 %v192_v7, %v188_v6  ;;  %v416_v22 = vld [vmem:[#allocation9 + $0x438] sm:$0xff]  ;;  %v897_v23 = vpack.c.bf16 %v413_v13, %v409_v12  ;;  %v421_v26 = vld [vmem:[#allocation9 + $0x460] sm:$0xff]  ;;  %v411_v29 = vld [vmem:[#allocation9 + $0x410] sm:$0xff] }
  0x67   :  { %876 = vmatprep.subr.bf16.mxu1 %v875_v24  ;;  %371 = vmatprep.mubr.f32.mxu1 %v212_v53  ;;  %v899_v24 = vpack.c.bf16 %v422_v16, %v418_v15  ;;  %v959_v28 = vpack.c.bf16 %v416_v22, %v412_v21  ;;  %v424_v33 = vld [vmem:[#allocation9 + $0x478] sm:$0xff]  ;;  %v901_v34 = vpack.c.bf16 %v421_v26, %v417_v25  ;;  %v419_v37 = vld [vmem:[#allocation9 + $0x450] sm:$0xff]  ;;  %v426_v42 = vld [vmem:[#allocation9 + $0x488] sm:$0xff] }
  0x68   :  { %814 = vmatpush1.bf16.msra.mxu0 %v813_v17  ;;  %v208_v17 = vrot.slane %v202_v51, %v1248_v4  ;;  %v428_v43 = vld [vmem:[#allocation9 + $0x498] sm:$0xff]  ;;  %v429_v47 = vld [vmem:[#allocation9 + $0x4a0] sm:$0xff]  ;;  %v427_v50 = vld [vmem:[#allocation9 + $0x490] sm:$0xff] }
  0x69   :  { %816 = vmatprep.subr.bf16.mxu0 %v815_v19  ;;  %v196_v19 = vld [vmem:[#allocation9 + $0x3d0] sm:$0xff]  ;;  %v432_v45 = vld [vmem:[#allocation9 + $0x4b8] sm:$0xff]  ;;  %v434_v53 = vld [vmem:[#allocation9 + $0x4c8] sm:$0xff] }
  0x6a   :  { %878 = vmatpush1.bf16.msra.mxu1 %v877_v35  ;;  %v893_v27 = vpack.c.bf16 %v200_v20, %v196_v19  ;;  %v967_v48 = vpack.c.bf16 %v432_v45, %v428_v43  ;;  %v431_v51 = vld [vmem:[#allocation9 + $0x4b0] sm:$0xff]  ;;  %v436_v55 = vld [vmem:[#allocation9 + $0x4d8] sm:$0xff]  ;;  %v433_v60 = vld [vmem:[#allocation9 + $0x4c0] sm:$0xff] }
  0x6b   :  { %880 = vmatprep.subr.bf16.mxu1 %v879_v38  ;;  %v423_v38 = vld [vmem:[#allocation9 + $0x470] sm:$0xff]  ;;  %v437_v61 = vld [vmem:[#allocation9 + $0x4e0] sm:$0xff]  ;;  %v442_v3 = vld [vmem:[#allocation9 + $0x508] sm:$0xff] }
  0x6c   :  { %818 = vmatpush1.bf16.msra.mxu0 %v817_v31  ;;  %v415_v31 = vld [vmem:[#allocation9 + $0x430] sm:$0xff]  ;;  %v965_v40 = vpack.c.bf16 %v423_v38, %v419_v37  ;;  %v909_v63 = vpack.c.bf16 %v437_v61, %v433_v60  ;;  %v444_v6 = vld [vmem:[#allocation9 + $0x518] sm:$0xff]  ;;  %v441_v9 = vld [vmem:[#allocation9 + $0x500] sm:$0xff] }
  0x6d   :  { %820 = vmatprep.subr.bf16.mxu0 %v819_v32  ;;  %v420_v32 = vld [vmem:[#allocation9 + $0x458] sm:$0xff]  ;;  %v961_v35 = vpack.c.bf16 %v415_v31, %v411_v29  ;;  %v435_v0 = vld [vmem:[#allocation9 + $0x4d0] sm:$0xff]  ;;  %v445_v10 = vld [vmem:[#allocation9 + $0x520] sm:$0xff] }
  0x6e   :  { %882 = vmatpush1.bf16.msra.mxu1 %v881_v52  ;;  %v963_v36 = vpack.c.bf16 %v424_v33, %v420_v32  ;;  %v969_v52 = vpack.c.bf16 %v431_v51, %v427_v50  ;;  %v913_v12 = vpack.c.bf16 %v445_v10, %v441_v9  ;;  %v443_v13 = vld [vmem:[#allocation9 + $0x510] sm:$0xff]  ;;  %v450_v16 = vld [vmem:[#allocation9 + $0x548] sm:$0xff]  ;;  %v456_v20 = vld [vmem:[#allocation9 + $0x578] sm:$0xff] }
  0x6f   :  { %884 = vmatprep.subr.bf16.mxu1 %v883_v54  ;;  %v438_v54 = vld [vmem:[#allocation9 + $0x4e8] sm:$0xff]  ;;  %v449_v21 = vld [vmem:[#allocation9 + $0x540] sm:$0xff]  ;;  %v451_v25 = vld [vmem:[#allocation9 + $0x550] sm:$0xff] }
  0x70   :  { %822 = vmatpush1.bf16.msra.mxu0 %v821_v41  ;;  %v430_v41 = vld [vmem:[#allocation9 + $0x4a8] sm:$0xff]  ;;  %v907_v58 = vpack.c.bf16 %v438_v54, %v434_v53  ;;  %v453_v22 = vld [vmem:[#allocation9 + $0x560] sm:$0xff]  ;;  %v455_v26 = vld [vmem:[#allocation9 + $0x570] sm:$0xff] }
  0x71   :  { %824 = vmatprep.subr.bf16.mxu0 %v823_v46  ;;  %v903_v44 = vpack.c.bf16 %v430_v41, %v426_v42  ;;  %v425_v46 = vld [vmem:[#allocation9 + $0x480] sm:$0xff]  ;;  %v462_v29 = vld [vmem:[#allocation9 + $0x5a8] sm:$0xff]  ;;  %v460_v31 = vld [vmem:[#allocation9 + $0x598] sm:$0xff] }
  0x72   :  { %886 = vmatpush1.bf16.msra.mxu1 %v885_v1  ;;  %v905_v49 = vpack.c.bf16 %v429_v47, %v425_v46  ;;  %v439_v1 = vld [vmem:[#allocation9 + $0x4f0] sm:$0xff]  ;;  %v464_v33 = vld [vmem:[#allocation9 + $0x5b8] sm:$0xff]  ;;  %v466_v41 = vld [vmem:[#allocation9 + $0x5c8] sm:$0xff] }
  0x73   :  { %888 = vmatprep.subr.bf16.mxu1 %v887_v5  ;;  %v973_v2 = vpack.c.bf16 %v439_v1, %v435_v0  ;;  %v446_v5 = vld [vmem:[#allocation9 + $0x528] sm:$0xff]  ;;  %v459_v38 = vld [vmem:[#allocation9 + $0x590] sm:$0xff]  ;;  %v472_v46 = vld [vmem:[#allocation9 + $0x5f8] sm:$0xff] }
  0x74   :  { %826 = vmatpush1.bf16.msra.mxu0 %v825_v59  ;;  %v440_v59 = vld [vmem:[#allocation9 + $0x4f8] sm:$0xff]  ;;  %v911_v7 = vpack.c.bf16 %v446_v5, %v442_v3  ;;  %v470_v43 = vld [vmem:[#allocation9 + $0x5e8] sm:$0xff]  ;;  %v465_v47 = vld [vmem:[#allocation9 + $0x5c0] sm:$0xff] }
  0x75   :  { %828 = vmatprep.subr.bf16.mxu0 %v827_v62  ;;  %v971_v62 = vpack.c.bf16 %v440_v59, %v436_v55  ;;  %v923_v45 = vpack.c.bf16 %v470_v43, %v466_v41  ;;  %v467_v51 = vld [vmem:[#allocation9 + $0x5d0] sm:$0xff]  ;;  %v474_v54 = vld [vmem:[#allocation9 + $0x608] sm:$0xff]  ;;  %v480_v60 = vld [vmem:[#allocation9 + $0x638] sm:$0xff] }
  0x76   :  { %890 = vmatpush1.bf16.msra.mxu1 %v889_v14  ;;  %v447_v14 = vld [vmem:[#allocation9 + $0x530] sm:$0xff]  ;;  %v478_v55 = vld [vmem:[#allocation9 + $0x628] sm:$0xff]  ;;  %v473_v61 = vld [vmem:[#allocation9 + $0x600] sm:$0xff] }
  0x77   :  { %892 = vmatprep.subr.bf16.mxu1 %v891_v18  ;;  %v977_v15 = vpack.c.bf16 %v447_v14, %v443_v13  ;;  %v452_v18 = vld [vmem:[#allocation9 + $0x558] sm:$0xff]  ;;  %v927_v59 = vpack.c.bf16 %v478_v55, %v474_v54  ;;  %v475_v1 = vld [vmem:[#allocation9 + $0x610] sm:$0xff]  ;;  %v482_v5 = vld [vmem:[#allocation9 + $0x648] sm:$0xff] }
  0x78   :  { %830 = vmatpush1.bf16.msra.mxu0 %v829_v8  ;;  %v448_v8 = vld [vmem:[#allocation9 + $0x538] sm:$0xff]  ;;  %v481_v10 = vld [vmem:[#allocation9 + $0x640] sm:$0xff]  ;;  %v483_v14 = vld [vmem:[#allocation9 + $0x650] sm:$0xff] }
  0x79   :  { %896 = vmatprep.subr.bf16.mxu0 %v895_v11  ;;  %v975_v11 = vpack.c.bf16 %v448_v8, %v444_v6  ;;  %v486_v6 = vld [vmem:[#allocation9 + $0x668] sm:$0xff]  ;;  %v488_v9 = vld [vmem:[#allocation9 + $0x678] sm:$0xff] }
  0x7a   :  { %894 = vmatpush1.bf16.msra.mxu1 %v893_v27  ;;  %v981_v27 = vpack.c.bf16 %v455_v26, %v451_v25  ;;  %v931_v8 = vpack.c.bf16 %v486_v6, %v482_v5  ;;  %v491_v26 = vld [vmem:[#allocation9 + $0x690] sm:$0xff]  ;;  %v506_v43 = vld [vmem:[#allocation9 + $0x708] sm:$0xff] }
  0x7b   :  { %301 = vmatmul.mubr.f32.vlgmr.msra.gmra.mrb[0].mxu0 %v208_v17  ;;  %960 = vmatprep.subr.bf16.mxu1 %v959_v28  ;;  %v458_v28 = vld [vmem:[#allocation9 + $0x588] sm:$0xff] }
  0x7c   :  { %898 = vmatpush1.bf16.msra.mxu0 %v897_v23  ;;  %v979_v23 = vpack.c.bf16 %v456_v20, %v452_v18  ;;  %v919_v32 = vpack.c.bf16 %v462_v29, %v458_v28  ;;  %v494_v18 = vld [vmem:[#allocation9 + $0x6a8] sm:$0xff] }
  0x7d   :  { %900 = vmatprep.subr.bf16.mxu0 %v899_v24  ;;  %372 = vmatmul.mubr.f32.vlgmr.msra.gmra.mrb[0].mxu1 %v208_v17  ;;  %v454_v17 = vld [vmem:[#allocation9 + $0x568] sm:$0xff]  ;;  %v917_v24 = vpack.c.bf16 %v453_v22, %v449_v21  ;;  %v496_v21 = vld [vmem:[#allocation9 + $0x6b8] sm:$0xff]  ;;  %v489_v22 = vld [vmem:[#allocation9 + $0x680] sm:$0xff] }
  0x7e   :  { %962 = vmatpush1.bf16.msra.mxu1 %v961_v35  ;;  %v915_v19 = vpack.c.bf16 %v454_v17, %v450_v16  ;;  %v461_v35 = vld [vmem:[#allocation9 + $0x5a0] sm:$0xff]  ;;  %v490_v17 = vld [vmem:[#allocation9 + $0x688] sm:$0xff] }
  0x7f   :  { %964 = vmatprep.subr.bf16.mxu1 %v963_v36  ;;  %v983_v36 = vpack.c.bf16 %v464_v33, %v460_v31  ;;  %v935_v20 = vpack.c.bf16 %v494_v18, %v490_v17  ;;  %v498_v29 = vld [vmem:[#allocation9 + $0x6c8] sm:$0xff] }
  0x80   :  { %902 = vmatpush1.bf16.msra.mxu0 %v901_v34  ;;  %v457_v34 = vld [vmem:[#allocation9 + $0x580] sm:$0xff]  ;;  %v502_v31 = vld [vmem:[#allocation9 + $0x6e8] sm:$0xff] }
  0x81   :  { %904 = vmatprep.subr.bf16.mxu0 %v903_v44  ;;  %v921_v37 = vpack.c.bf16 %v461_v35, %v457_v34  ;;  %v468_v44 = vld [vmem:[#allocation9 + $0x5d8] sm:$0xff]  ;;  %v939_v33 = vpack.c.bf16 %v502_v31, %v498_v29  ;;  %v497_v35 = vld [vmem:[#allocation9 + $0x6c0] sm:$0xff]  ;;  %v514_v55 = vld [vmem:[#allocation9 + $0x748] sm:$0xff] }
  0x82   :  { %966 = vmatpush1.bf16.msra.mxu1 %v965_v40  ;;  %v463_v40 = vld [vmem:[#allocation9 + $0x5b0] sm:$0xff]  ;;  %v504_v34 = vld [vmem:[#allocation9 + $0x6f8] sm:$0xff]  ;;  %v522_v6 = vld [vmem:[#allocation9 + $0x788] sm:$0xff] }
  0x83   :  { %968 = vmatprep.subr.bf16.mxu1 %v967_v48  ;;  %v985_v42 = vpack.c.bf16 %v463_v40, %v459_v38  ;;  %v469_v48 = vld [vmem:[#allocation9 + $0x5e0] sm:$0xff]  ;;  %v499_v40 = vld [vmem:[#allocation9 + $0x6d0] sm:$0xff]  ;;  %v530_v17 = vld [vmem:[#allocation9 + $0x7c8] sm:$0xff] }
  0x84   :  { %906 = vmatpush1.bf16.msra.mxu0 %v905_v49  ;;  %v987_v49 = vpack.c.bf16 %v472_v46, %v468_v44  ;;  %v925_v50 = vpack.c.bf16 %v469_v48, %v465_v47  ;;  %v510_v44 = vld [vmem:[#allocation9 + $0x728] sm:$0xff]  ;;  %v512_v47 = vld [vmem:[#allocation9 + $0x738] sm:$0xff]  ;;  %v505_v48 = vld [vmem:[#allocation9 + $0x700] sm:$0xff] }
  0x85   :  { %908 = vmatprep.subr.bf16.mxu0 %v907_v58  ;;  %v476_v58 = vld [vmem:[#allocation9 + $0x618] sm:$0xff]  ;;  %v943_v46 = vpack.c.bf16 %v510_v44, %v506_v43  ;;  %v203_v31 = vld [vmem:[%s1292_s3] sm:$0xf] }
  0x86   :  { %970 = vmatpush1.bf16.msra.mxu1 %v969_v52  ;;  %v471_v52 = vld [vmem:[#allocation9 + $0x5f0] sm:$0xff] }
  0x87   :  { %972 = vmatprep.subr.bf16.mxu1 %v971_v62  ;;  %v989_v53 = vpack.c.bf16 %v471_v52, %v467_v51  ;;  %v477_v62 = vld [vmem:[#allocation9 + $0x620] sm:$0xff]  ;;  %v507_v52 = vld [vmem:[#allocation9 + $0x710] sm:$0xff] }
  0x88   :  { %910 = vmatpush1.bf16.msra.mxu0 %v909_v63  ;;  %v991_v63 = vpack.c.bf16 %v480_v60, %v476_v58  ;;  %v929_v0 = vpack.c.bf16 %v477_v62, %v473_v61  ;;  %v518_v58 = vld [vmem:[#allocation9 + $0x768] sm:$0xff]  ;;  %v520_v61 = vld [vmem:[#allocation9 + $0x778] sm:$0xff]  ;;  %v513_v62 = vld [vmem:[#allocation9 + $0x740] sm:$0xff] }
  0x89   :  { %912 = vmatprep.subr.bf16.mxu0 %v911_v7  ;;  %v484_v7 = vld [vmem:[#allocation9 + $0x658] sm:$0xff]  ;;  %v947_v60 = vpack.c.bf16 %v518_v58, %v514_v55 }
  0x8a   :  { %974 = vmatpush1.bf16.msra.mxu1 %v973_v2  ;;  %v479_v2 = vld [vmem:[#allocation9 + $0x630] sm:$0xff] }
  0x8b   :  { %976 = vmatprep.subr.bf16.mxu1 %v975_v11  ;;  %v993_v3 = vpack.c.bf16 %v479_v2, %v475_v1  ;;  %v485_v11 = vld [vmem:[#allocation9 + $0x660] sm:$0xff]  ;;  %v515_v2 = vld [vmem:[#allocation9 + $0x750] sm:$0xff] }
  0x8c   :  { %914 = vmatpush1.bf16.msra.mxu0 %v913_v12  ;;  %v995_v12 = vpack.c.bf16 %v488_v9, %v484_v7  ;;  %v933_v13 = vpack.c.bf16 %v485_v11, %v481_v10  ;;  %v526_v7 = vld [vmem:[#allocation9 + $0x7a8] sm:$0xff]  ;;  %v528_v10 = vld [vmem:[#allocation9 + $0x7b8] sm:$0xff]  ;;  %v521_v11 = vld [vmem:[#allocation9 + $0x780] sm:$0xff] }
  0x8d   :  { %916 = vmatprep.subr.bf16.mxu0 %v915_v19  ;;  %v492_v19 = vld [vmem:[#allocation9 + $0x698] sm:$0xff]  ;;  %v951_v9 = vpack.c.bf16 %v526_v7, %v522_v6  ;;  %v763_v7 = vld [vmem:[%s1292_s3 + $0x4] sm:$0xf]  ;;  %s1160_s3 = smov [#allocation10]  }
  0x8e   :  { %978 = vmatpush1.bf16.msra.mxu1 %v977_v15  ;;  %v487_v15 = vld [vmem:[#allocation9 + $0x670] sm:$0xff]  ;;  %s750_s29 = sshll.u32 %s1160_s3, 4  ;;  %s751_s29 = int_to_ptr.vmem [resolvable:$true] %s750_s29 }
  0x8f   :  { %980 = vmatprep.subr.bf16.mxu1 %v979_v23  ;;  %v997_v16 = vpack.c.bf16 %v487_v15, %v483_v14  ;;  %v493_v23 = vld [vmem:[#allocation9 + $0x6a0] sm:$0xff]  ;;  %v523_v15 = vld [vmem:[#allocation9 + $0x790] sm:$0xff]  ;;  %s1127_s30 = scalar_lea.vmem %s751_s29, 64  ;;  %p1132_p11 = scmp.lt.s32.totalorder %s751_s29, %s751_s29 }
  0x90   :  { %918 = vmatpush1.bf16.msra.mxu0 %v917_v24  ;;  %v999_v24 = vpack.c.bf16 %v496_v21, %v492_v19  ;;  %v937_v25 = vpack.c.bf16 %v493_v23, %v489_v22  ;;  %v534_v19 = vld [vmem:[#allocation9 + $0x7e8] sm:$0xff]  ;;  %v536_v21 = vld [vmem:[#allocation9 + $0x7f8] sm:$0xff]  ;;  %p1128_p10 = scmp.ne.s32.totalorder %s751_s29, %s1127_s30  ;;  %p1133_p12 = scmp.lt.s32.totalorder %s1127_s30, %s1127_s30 }
  0x91   :  { %920 = vmatprep.subr.bf16.mxu0 %v919_v32  ;;  %v500_v32 = vld [vmem:[#allocation9 + $0x6d8] sm:$0xff]  ;;  %v955_v22 = vpack.c.bf16 %v534_v19, %v530_v17 }
  0x92   :  { %982 = vmatpush1.bf16.msra.mxu1 %v981_v27  ;;  %v495_v27 = vld [vmem:[#allocation9 + $0x6b0] sm:$0xff]  ;;  %p1134_p13 = por %p1133_p12, %p1132_p11 }
  0x93   :  { %984 = vmatprep.subr.bf16.mxu1 %v983_v36  ;;  %v1001_v28 = vpack.c.bf16 %v495_v27, %v491_v26  ;;  %v501_v36 = vld [vmem:[#allocation9 + $0x6e0] sm:$0xff]  ;;  %v531_v26 = vld [vmem:[#allocation9 + $0x7d0] sm:$0xff] }
  0x94   :  { %922 = vmatpush1.bf16.msra.mxu0 %v921_v37  ;;  %v1003_v37 = vpack.c.bf16 %v504_v34, %v500_v32  ;;  %v941_v38 = vpack.c.bf16 %v501_v36, %v497_v35  ;;  %v219_v32 = vrot.slane %v203_v31, %v1248_v4  ;;  %v230_v35 = vsub.s32 3, %v1239_v30  ;;  %p1135_p0 = pnand %p1134_p13, %p1128_p10 }
  0x95   :  { %924 = vmatprep.subr.bf16.mxu0 %v923_v45  ;;  %v508_v45 = vld [vmem:[#allocation9 + $0x718] sm:$0xff] }
  0x96   :  { %986 = vmatpush1.bf16.msra.mxu1 %v985_v42  ;;  %v503_v42 = vld [vmem:[#allocation9 + $0x6f0] sm:$0xff]  ;;  %v231_v43 = vrot.slane %v203_v31, %v230_v35 }
  0x97   :  { %988 = vmatprep.subr.bf16.mxu1 %v987_v49  ;;  %v1005_v41 = vpack.c.bf16 %v503_v42, %v499_v40  ;;  %v509_v49 = vld [vmem:[#allocation9 + $0x720] sm:$0xff] }
  0x98   :  { %926 = vmatpush1.bf16.msra.mxu0 %v925_v50  ;;  %v1007_v50 = vpack.c.bf16 %v512_v47, %v508_v45  ;;  %v945_v51 = vpack.c.bf16 %v509_v49, %v505_v48 }
  0x99   :  { %928 = vmatprep.subr.bf16.mxu0 %v927_v59  ;;  %v516_v59 = vld [vmem:[#allocation9 + $0x758] sm:$0xff] }
  0x9a   :  { %990 = vmatpush1.bf16.msra.mxu1 %v989_v53  ;;  %v511_v53 = vld [vmem:[#allocation9 + $0x730] sm:$0xff] }
  0x9b   :  { %992 = vmatprep.subr.bf16.mxu1 %v991_v63  ;;  %v1009_v54 = vpack.c.bf16 %v511_v53, %v507_v52  ;;  %v517_v63 = vld [vmem:[#allocation9 + $0x760] sm:$0xff] }
  0x9c   :  { %930 = vmatpush1.bf16.msra.mxu0 %v929_v0  ;;  %v1011_v0 = vpack.c.bf16 %v520_v61, %v516_v59  ;;  %v949_v1 = vpack.c.bf16 %v517_v63, %v513_v62 }
  0x9d   :  { %932 = vmatprep.subr.bf16.mxu0 %v931_v8  ;;  %v524_v8 = vld [vmem:[#allocation9 + $0x798] sm:$0xff] }
  0x9e   :  { %994 = vmatpush1.bf16.msra.mxu1 %v993_v3  ;;  %v519_v3 = vld [vmem:[#allocation9 + $0x770] sm:$0xff] }
  0x9f   :  { %996 = vmatprep.subr.bf16.mxu1 %v995_v12  ;;  %v1013_v5 = vpack.c.bf16 %v519_v3, %v515_v2  ;;  %v525_v12 = vld [vmem:[#allocation9 + $0x7a0] sm:$0xff] }
  0xa0   :  { %934 = vmatpush1.bf16.msra.mxu0 %v933_v13  ;;  %v1015_v13 = vpack.c.bf16 %v528_v10, %v524_v8  ;;  %v953_v14 = vpack.c.bf16 %v525_v12, %v521_v11  ;;  %v555_v8 = vrot.slane %v763_v7, %v1248_v4 }
  0xa1   :  { %936 = vmatprep.subr.bf16.mxu0 %v935_v20  ;;  %v532_v20 = vld [vmem:[#allocation9 + $0x7d8] sm:$0xff] }
  0xa2   :  { %998 = vmatpush1.bf16.msra.mxu1 %v997_v16  ;;  %v527_v16 = vld [vmem:[#allocation9 + $0x7b0] sm:$0xff]  ;;  %v1019_v23 = vpack.c.bf16 %v536_v21, %v532_v20 }
  0xa3   :  { %1000 = vmatprep.subr.bf16.mxu1 %v999_v24  ;;  %v1017_v18 = vpack.c.bf16 %v527_v16, %v523_v15  ;;  %v529_v24 = vld [vmem:[#allocation9 + $0x7c0] sm:$0xff] }
  0xa4   :  { %938 = vmatpush1.bf16.msra.mxu0 %v937_v25  ;;  %v533_v25 = vld [vmem:[#allocation9 + $0x7e0] sm:$0xff] }
  0xa5   :  { %940 = vmatprep.subr.bf16.mxu0 %v939_v33  ;;  %v957_v27 = vpack.c.bf16 %v533_v25, %v529_v24  ;;  %v223_v33 = vrot.slane %v203_v31, %v1242_v39 }
  0xa6   :  { %1002 = vmatpush1.bf16.msra.mxu1 %v1001_v28  ;;  %v535_v28 = vld [vmem:[#allocation9 + $0x7f0] sm:$0xff] }
  0xa7   :  { %1004 = vmatprep.subr.bf16.mxu1 %v1003_v37  ;;  %v1021_v29 = vpack.c.bf16 %v535_v28, %v531_v26 }
  0xa8   :  { %942 = vmatpush1.bf16.msra.mxu0 %v941_v38 }
  0xa9   :  { %944 = vmatprep.subr.bf16.mxu0 %v943_v46 }
  0xaa   :  { %1006 = vmatpush1.bf16.msra.mxu1 %v1005_v41  ;;  %v226_v41 = vsub.s32 2, %v1239_v30  ;;  %v72_v30 = vld [vmem:[#allocation2 + $0x1] sm:$0x1] }
  0xab   :  { %1008 = vmatprep.subr.bf16.mxu1 %v1007_v50 }
  0xac   :  { %946 = vmatpush1.bf16.msra.mxu0 %v945_v51  ;;  %v227_v46 = vrot.slane %v203_v31, %v226_v41  ;;  %v563_v20 = vrot.slane %v763_v7, %v226_v41 }
  0xad   :  { %948 = vmatprep.subr.bf16.mxu0 %v947_v60 }
  0xae   :  { %1010 = vmatpush1.bf16.msra.mxu1 %v1009_v54 }
  0xaf   :  { %1012 = vmatprep.subr.bf16.mxu1 %v1011_v0 }
  0xb0   :  { %950 = vmatpush1.bf16.msra.mxu0 %v949_v1 }
  0xb1   :  { %952 = vmatprep.subr.bf16.mxu0 %v951_v9  ;;  %v559_v9 = vrot.slane %v763_v7, %v1242_v39 }
  0xb2   :  { %1014 = vmatpush1.bf16.msra.mxu1 %v1013_v5 }
  0xb3   :  { %1016 = vmatprep.subr.bf16.mxu1 %v1015_v13 }
  0xb4   :  { %954 = vmatpush1.bf16.msra.mxu0 %v953_v14 }
  0xb5   :  { %956 = vmatprep.subr.bf16.mxu0 %v955_v22 }
  0xb6   :  { %1018 = vmatpush1.bf16.msra.mxu1 %v1017_v18  ;;  %v567_v18 = vrot.slane %v763_v7, %v230_v35 }
  0xb7   :  { %1020 = vmatprep.subr.bf16.mxu1 %v1019_v23 }
  0xb8   :  { %958 = vmatpush1.bf16.msra.mxu0 %v957_v27  ;;  %v406_v27 = vld [vmem:[#allocation2 + $0x3] sm:$0x1] }
  0xba   :  { %1022 = vmatpush1.bf16.msra.mxu1 %v1021_v29 }
 0x14e   :  { %v302_v34 = vpop.f32.mrb[0].mxu0 }
 0x14f   :  { %v303_v36 = vadd.f32 %v302_v34, %v219_v32  ;;  %v304_v37 = vpop.f32.mrb[1].mxu0 }
 0x150   :  { %v305_v38 = vadd.f32 %v304_v37, %v223_v33  ;;  %v373_v44 = vpop.f32.mrb[0].mxu1 }
 0x151   :  { %v760_v40 = vmul.f32 -1.442695, %v303_v36  ;;  %v375_v45 = vpop.f32.mrb[1].mxu1  ;;  %v374_v49 = vadd.f32 %v373_v44, %v227_v46 }
 0x152   :  { %v761_v42 = vmul.f32 -1.442695, %v305_v38  ;;  %v376_v47 = vadd.f32 %v375_v45, %v231_v43 }
 0x153   :  { %1029 = vpow2.f32 %v760_v40 }
 0x154   :  { %1031 = vpow2.f32 %v761_v42  ;;  %v762_v48 = vmul.f32 -1.442695, %v376_v47 }
 0x156   :  { %1033 = vpow2.f32 %v762_v48 }
 0x157   :  { %1035 = vtanh.f32 %v374_v49 }
 0x15d   :  { %v1030_v50 = vpop.eup %1029 }
 0x15e   :  { %v1032_v51 = vpop.eup %1031  ;;  %v381_v52 = vadd.f32 1.0, %v1030_v50 }
 0x15f   :  { %v387_v53 = vadd.f32 1.0, %v1032_v51 }
 0x160   :  { %1037 = vrcp.f32 %v381_v52  ;;  %v1034_v54 = vpop.eup %1033 }
 0x161   :  { %1039 = vrcp.f32 %v387_v53  ;;  %v1036_v55 = vpop.eup %1035  ;;  %v394_v59 = vadd.f32 1.0, %v1034_v54 }
 0x163   :  { %1041 = vrcp.f32 %v394_v59 }
 0x16a   :  { %v1038_v58 = vpop.eup %1037 }
 0x16b   :  { %v1040_v60 = vpop.eup %1039  ;;  %v398_v61 = vmul.f32 %v1038_v58, %v1036_v55 }
 0x16c   :  { %v397_v62 = vmul.f32 %v1040_v60, %v72_v30 }
 0x16d   :  { %v1042_v0 = vpop.eup %1041 }
 0x16e   :  { %v399_v63 = vadd.f32 %v398_v61, %v397_v62 }
 0x170   :  { %1043 = vtanh.f32 %v399_v63  ;;  %403 = vst.msk [vmem:[#allocation2 + $0x1] sm:$0x1] %vm1228_vm1, %v399_v63 }
 0x17a   :  { %v1044_v1 = vpop.eup %1043 }
 0x17b   :  { %v401_v2 = vmul.f32 %v1044_v1, %v1042_v0 }
 0x17d   :  { %402 = vst.msk [vmem:[#allocation2] sm:$0x1] %vm1228_vm1, %v401_v2  ;;  %404 = vst.msk [vmem:[#allocation3] sm:$0x1] %vm1228_vm1, %v401_v2 }
 0x184   :  { %v537_v3 = vld [vmem:[#allocation3] sm:$0x3] }
 0x185   :  { %v544_v5 = vrot.slane %v537_v3, %v1248_v4  ;;  %v548_v6 = vrot.slane %v537_v3, %v1242_v39 }
 0x187   :  { %636 = vmatprep.mubr.f32.mxu0 %v548_v6  ;;  %707 = vmatprep.mubr.f32.mxu1 %v548_v6 }
 0x188   :  { %637 = vmatmul.mubr.f32.vlgmr.msra.gmra.mrb[2].mxu0 %v544_v5  ;;  %708 = vmatmul.mubr.f32.vlgmr.msra.gmra.mrb[2].mxu1 %v544_v5 }
 0x25b   :  { %v638_v10 = vpop.f32.mrb[2].mxu0  ;;  %v709_v11 = vpop.f32.mrb[2].mxu1 }
 0x25c   :  { %v639_v12 = vadd.f32 %v638_v10, %v555_v8  ;;  %v640_v13 = vpop.f32.mrb[3].mxu0  ;;  %v711_v14 = vpop.f32.mrb[3].mxu1  ;;  %v710_v22 = vadd.f32 %v709_v11, %v563_v20 }
 0x25d   :  { %v641_v15 = vadd.f32 %v640_v13, %v559_v9  ;;  %v712_v19 = vadd.f32 %v711_v14, %v567_v18 }
 0x25e   :  { %v764_v16 = vmul.f32 -1.442695, %v639_v12 }
 0x25f   :  { %v765_v17 = vmul.f32 -1.442695, %v641_v15  ;;  %v766_v21 = vmul.f32 -1.442695, %v712_v19 }
 0x260   :  { %1045 = vpow2.f32 %v764_v16 }
 0x261   :  { %1047 = vpow2.f32 %v765_v17 }
 0x262   :  { %1049 = vpow2.f32 %v766_v21 }
 0x263   :  { %1051 = vtanh.f32 %v710_v22 }
 0x26a   :  { %v1046_v23 = vpop.eup %1045 }
 0x26b   :  { %v1048_v24 = vpop.eup %1047  ;;  %v717_v4 = vadd.f32 1.0, %v1046_v23 }
 0x26c   :  { %v723_v39 = vadd.f32 1.0, %v1048_v24  ;;  %v1050_v25 = vpop.eup %1049 }
 0x26d   :  { %1053 = vrcp.f32 %v717_v4  ;;  %v1052_v26 = vpop.eup %1051  ;;  %v730_v32 = vadd.f32 1.0, %v1050_v25 }
 0x26e   :  { %1055 = vrcp.f32 %v723_v39 }
 0x26f   :  { %1057 = vrcp.f32 %v730_v32 }
 0x277   :  { %v1054_v28 = vpop.eup %1053 }
 0x278   :  { %v1056_v29 = vpop.eup %1055  ;;  %v734_v31 = vmul.f32 %v1054_v28, %v1052_v26 }
 0x279   :  { %v733_v33 = vmul.f32 %v1056_v29, %v406_v27  ;;  %v1058_v35 = vpop.eup %1057 }
 0x27b   :  { %v735_v34 = vadd.f32 %v734_v31, %v733_v33 }
 0x27d   :  { %1059 = vtanh.f32 %v735_v34  ;;  %739 = vst.msk [vmem:[#allocation2 + $0x3] sm:$0x1] %vm1228_vm1, %v735_v34 }
 0x287   :  { %v1060_v36 = vpop.eup %1059 }
 0x288   :  { %v737_v37 = vmul.f32 %v1060_v36, %v1058_v35 }
 0x28a   :  { %738 = vst.msk [vmem:[#allocation2 + $0x2] sm:$0x1] %vm1228_vm1, %v737_v37 }
 0x291   :  { %v740_v38 = vld [vmem:[#allocation2] sm:$0xf] }
 0x292   :  { %743 = vst.msk [vmem:[#allocation10] sm:$0xf] %vm1223_vm0, %v740_v38 }
 0x293   :  { %1138 = shalt.err (!%p1135_p0)
}
 0x294   :  { %s1139_s7 = scalar_lea.hbm %s1293_s4, 64 }
 0x295   :  { %p1140_p1 = scmp.ne.s32.totalorder %s1293_s4, %s1139_s7  ;;  %p1143_p2 = scmp.lt.u32.totalorder %s1139_s7, %s1293_s4 }
 0x297   :  { %p1145_p3 = pnand %p1143_p2, %p1140_p1 }
 0x299   :  { %1148 = shalt.err (!%p1145_p3)
}
 0x29a   :  { %753 = dma.vmem_to_hbm [thread:$0]  %s751_s29, 64, %s1293_s4, [#allocation6]  }
 0x29b   :  { %1153 = dma.done.wait [#allocation6], 64  }
 0x29c   :  { %1154 = vsyncadd [#allocation6], 4294967232 }
 0x29d   :  { %757 = vsyncpa [#allocation5], 1 }
 0x29e   :  { %758 = vsyncpa [#allocation8], 1 }
 0x29f   :  { %759 = vsyncpa [#allocation6], 1 }

</bundles_post_ra>
